<compile_context>
chip_gen: v7x
topology: tpu7x:2x2x1
jax: 0.10.0
libtpu: 0.0.40
codegen_flags: <defaults>
</compile_context>

<pallas_src>
import functools

import jax
import jax.numpy as jnp
from jax import lax
from jax.experimental import pallas as pl
from jax.experimental.pallas import tpu as pltpu


def _round_up(v, m):
    return (v + m - 1) // m * m


# ---------------- Pass 1: full-batch statistics -> fused BN scale/shift ----------------
def _stats_kernel(x_ref, w1_ref, p_ref, stat_ref, *, batch, eps):
    i = pl.program_id(0)
    tb = x_ref.shape[0]

    @pl.when(i == 0)
    def _():
        stat_ref[...] = jnp.zeros_like(stat_ref)

    # Linear 1 on the MXU: bf16 operands, f32 accumulation. p_ref row 0 = b1 (f32).
    h = jnp.dot(x_ref[...].astype(jnp.bfloat16), w1_ref[...],
                preferred_element_type=jnp.float32) + p_ref[0:1, :]

    # Mask padded batch rows so they do not contribute to the statistics.
    row = lax.broadcasted_iota(jnp.int32, h.shape, 0) + i * tb
    h = jnp.where(row < batch, h, 0.0)

    # Accumulate sum(h) and sum(h*h); var = E[h^2] - mean^2 -> independent reductions.
    stat_ref[0:1, :] += jnp.sum(h, axis=0, keepdims=True)
    stat_ref[1:2, :] += jnp.sum(h * h, axis=0, keepdims=True)

    @pl.when(i == pl.num_programs(0) - 1)
    def _():
        inv_n = jnp.float32(1.0 / batch)
        mean = stat_ref[0:1, :] * inv_n
        var = stat_ref[1:2, :] * inv_n - mean * mean
        scale = p_ref[1:2, :] * lax.rsqrt(var + eps)   # gamma / sqrt(var + eps)
        shift = p_ref[2:3, :] - mean * scale           # beta - mean * scale
        stat_ref[0:1, :] = scale
        stat_ref[1:2, :] = shift


# ---------------- Pass 2: normalize + ReLU + Linear 2 (per batch tile) ----------------
def _apply_kernel(x_ref, w1_ref, p_ref, stat_ref, w2_ref, o_ref):
    h = jnp.dot(x_ref[...].astype(jnp.bfloat16), w1_ref[...],
                preferred_element_type=jnp.float32) + p_ref[0:1, :]
    # Fused BatchNorm affine + ReLU, all in f32 on the VPU.
    h = jnp.maximum(h * stat_ref[0:1, :] + stat_ref[1:2, :], 0.0)
    o_ref[...] = (jnp.dot(h.astype(jnp.bfloat16), w2_ref[...],
                          preferred_element_type=jnp.float32)
                  + p_ref[3:4, :]).astype(o_ref.dtype)


def encoder1d_forward(x, w1, b1, gamma, beta, w2, b2, *, block_b=128, eps=1e-5):
    B, Din = x.shape
    H = w1.shape[1]
    Z = w2.shape[1]
    # PyTorch BatchNorm1d (training mode) rejects batch size 1; mirror that constraint.
    assert B > 1, "BatchNorm1d training-mode forward requires batch size > 1"

    Dp = _round_up(Din, 128)                        # lane-dense contraction width
    P = max(_round_up(H, 128), _round_up(Z, 128))   # shared lane-dense hidden/output width
    TB = _round_up(min(block_b, _round_up(B, 8)), 8)
    Bp = _round_up(B, TB)
    T = Bp // TB

    # Zero-pad into tile-aligned, lane-dense layouts (zero padding is exact for this graph).
    xp = jnp.zeros((Bp, Dp), jnp.float32).at[:B, :Din].set(x.astype(jnp.float32))
    w1p = jnp.zeros((Dp, P), jnp.bfloat16).at[:Din, :H].set(w1.astype(jnp.bfloat16))
    w2p = jnp.zeros((P, P), jnp.bfloat16).at[:H, :Z].set(w2.astype(jnp.bfloat16))
    # Pack all small per-feature vectors into ONE (8, P) f32 array -> one input DMA.
    params = jnp.zeros((8, P), jnp.float32)
    params = params.at[0, :H].set(b1)      # Linear1 bias
    params = params.at[1, :H].set(gamma)   # BN weight
    params = params.at[2, :H].set(beta)    # BN bias
    params = params.at[3, :Z].set(b2)      # Linear2 bias

    # Pass 1: resident accumulator over the (sequential) batch-tile axis.
    stats = pl.pallas_call(
        functools.partial(_stats_kernel, batch=B, eps=eps),
        out_shape=jax.ShapeDtypeStruct((8, P), jnp.float32),
        grid=(T,),
        in_specs=[
            pl.BlockSpec((TB, Dp), lambda i: (i, 0)),
            pl.BlockSpec((Dp, P), lambda i: (0, 0)),
            pl.BlockSpec((8, P), lambda i: (0, 0)),
        ],
        out_specs=pl.BlockSpec((8, P), lambda i: (0, 0)),
        compiler_params=pltpu.CompilerParams(dimension_semantics=("arbitrary",)),
    )(xp, w1p, params)

    # Pass 2: independent batch tiles -> "parallel" (second TensorCore on v7x).
    outp = pl.pallas_call(
        _apply_kernel,
        out_shape=jax.ShapeDtypeStruct((Bp, P), jnp.float32),
        grid=(T,),
        in_specs=[
            pl.BlockSpec((TB, Dp), lambda i: (i, 0)),
            pl.BlockSpec((Dp, P), lambda i: (0, 0)),
            pl.BlockSpec((8, P), lambda i: (0, 0)),
            pl.BlockSpec((8, P), lambda i: (0, 0)),
            pl.BlockSpec((P, P), lambda i: (0, 0)),
        ],
        out_specs=pl.BlockSpec((TB, P), lambda i: (i, 0)),
        compiler_params=pltpu.CompilerParams(dimension_semantics=("parallel",)),
    )(xp, w1p, params, stats, w2p)

    return outp[:B, :Z]


# ---------------- helpers mirroring the PyTorch module ----------------
def apply_tensor_constraints(x, x_dim):
    # BaseEncoder.apply_tensor_constraints (1-D case): single example gets a batch dim.
    if x.ndim == len(x_dim):
        x = x[None, ...]
    assert tuple(x.shape[-len(x_dim):]) == tuple(x_dim)
    return x


def init_params(key, d_in, hidden, z):
    # torch.nn.Linear default init (uniform +/- 1/sqrt(fan_in)); BN gamma=1, beta=0.
    k1, k2, k3, k4 = jax.random.split(key, 4)
    lim1 = 1.0 / jnp.sqrt(jnp.float32(d_in))
    w1 = jax.random.uniform(k1, (d_in, hidden), jnp.float32, -lim1, lim1)
    b1 = jax.random.uniform(k2, (hidden,), jnp.float32, -lim1, lim1)
    gamma = jnp.ones((hidden,), jnp.float32)
    beta = jnp.zeros((hidden,), jnp.float32)
    lim2 = 1.0 / jnp.sqrt(jnp.float32(hidden))
    w2 = jax.random.uniform(k3, (hidden, z), jnp.float32, -lim2, lim2)
    b2 = jax.random.uniform(k4, (z,), jnp.float32, -lim2, lim2)
    return w1, b1, gamma, beta, w2, b2


def reference_matched(x, w1, b1, gamma, beta, w2, b2, eps=1e-5):
    # Same operand precision as the kernel (bf16 matmul operands, f32 accumulation,
    # E[h^2]-mean^2 variance, fused scale/shift) -> tight tolerance comparison.
    h = jnp.dot(x.astype(jnp.bfloat16), w1.astype(jnp.bfloat16),
                preferred_element_type=jnp.float32) + b1
    mean = jnp.mean(h, axis=0, keepdims=True)
    var = jnp.mean(h * h, axis=0, keepdims=True) - mean * mean
    scale = gamma * lax.rsqrt(var + eps)
    shift = beta - mean * scale
    h = jnp.maximum(h * scale + shift, 0.0)
    return jnp.dot(h.astype(jnp.bfloat16), w2.astype(jnp.bfloat16),
                   preferred_element_type=jnp.float32) + b2


def reference_f32(x, w1, b1, gamma, beta, w2, b2, eps=1e-5):
    # PyTorch-style float32 reference (Linear -> BatchNorm1d training -> ReLU -> Linear).
    h = x @ w1 + b1
    mean = jnp.mean(h, axis=0, keepdims=True)
    var = jnp.mean((h - mean) ** 2, axis=0, keepdims=True)
    h = (h - mean) / jnp.sqrt(var + eps) * gamma + beta
    h = jnp.maximum(h, 0.0)
    return h @ w2 + b2


if __name__ == "__main__":
    # Encoder_1D(x_dim=(16,), z_dim=(8,), hidden_dim=(64,), batch_norm=True)
    x_dim = (16,)
    z_dim = (8,)
    hidden = 64
    batch = 12   # not a multiple of 8 -> exercises the padded-row masking path

    key = jax.random.PRNGKey(0)
    kx, kp = jax.random.split(key)
    x = jax.random.normal(kx, (batch,) + x_dim, jnp.float32)
    params = init_params(kp, x_dim[0], hidden, z_dim[0])

    x = apply_tensor_constraints(x, x_dim)

    out = encoder1d_forward(x, *params, block_b=8)   # 2 batch tiles -> exercises tiling
    out = jax.block_until_ready(out)
    assert out.shape == (batch, z_dim[0])

    # Strict check against a same-precision JAX reference.
    ref = reference_matched(x, *params)
    assert jnp.allclose(out, ref, atol=1e-3, rtol=1e-3), \
        float(jnp.max(jnp.abs(out - ref)))

    # Sanity check against the pure-f32 PyTorch-style math (bf16 MXU operands => loose tol).
    ref32 = reference_f32(x, *params)
    assert float(jnp.max(jnp.abs(out - ref32))) < 0.1

    print("KERNEL_OK")
</pallas_src>

<mosaic_0001>
module attributes {stable_mosaic.version = 11 : i64} {
  func.func @_stats_kernel(%arg0: i32, %arg1: memref<8x128xf32, #tpu.memory_space<vmem>>, %arg2: memref<128x128xbf16, #tpu.memory_space<vmem>>, %arg3: memref<8x128xf32, #tpu.memory_space<vmem>>, %arg4: memref<8x128xf32, #tpu.memory_space<vmem>>) attributes {dimension_semantics = [#tpu.dimension_semantics<arbitrary>], iteration_bounds = array<i64: 2>, scalar_prefetch = 0 : i64, scratch_operands = 0 : i64, tpu.core_type = #tpu.core_type<tc>, window_params = [{transform_indices = @transform_0, window_bounds = array<i64: 8, 128>}, {pipeline_mode = #tpu.pipeline_mode<synchronous>, transform_indices = @transform_1, window_bounds = array<i64: 128, 128>}, {pipeline_mode = #tpu.pipeline_mode<synchronous>, transform_indices = @transform_2, window_bounds = array<i64: 8, 128>}, {pipeline_mode = #tpu.pipeline_mode<synchronous>, transform_indices = @transform_3, window_bounds = array<i64: 8, 128>}]} {
    %c0_i32 = arith.constant 0 : i32
    %0 = arith.cmpi eq, %arg0, %c0_i32 : i32
    %1 = arith.extui %0 : i1 to i32
    %c0_i32_0 = arith.constant 0 : i32
    %2 = arith.cmpi ne, %1, %c0_i32_0 : i32
    scf.if %2 {
      %cst_17 = arith.constant 0.000000e+00 : f32
      %32 = vector.broadcast %cst_17 : f32 to vector<8x128xf32>
      %c0_18 = arith.constant 0 : index
      %c0_19 = arith.constant 0 : index
      %33 = vector.load %arg4[%c0_18, %c0_19] : memref<8x128xf32, #tpu.memory_space<vmem>>, vector<8x128xf32>
      tpu.vector_store %arg4[%c0_18, %c0_19], %32 {strides = array<i32>} : memref<8x128xf32, #tpu.memory_space<vmem>>, vector<8x128xf32>,
    } else {
    }
    %c0 = arith.constant 0 : index
    %c0_1 = arith.constant 0 : index
    %3 = vector.load %arg1[%c0, %c0_1] : memref<8x128xf32, #tpu.memory_space<vmem>>, vector<8x128xf32>
    %4 = arith.truncf %3 : vector<8x128xf32> to vector<8x128xbf16>
    %c0_2 = arith.constant 0 : index
    %c0_3 = arith.constant 0 : index
    %5 = vector.load %arg2[%c0_2, %c0_3] : memref<128x128xbf16, #tpu.memory_space<vmem>>, vector<128x128xbf16>
    %cst = arith.constant dense<0.000000e+00> : vector<8x128xf32>
    %6 = tpu.matmul %4, %5, %cst {dimension_numbers = #tpu.dot_dimension_numbers<[1], [0], [0], [1], [0, 0, 1, 1], [], []>} : vector<8x128xbf16>, vector<128x128xbf16>, vector<8x128xf32> -> vector<8x128xf32>
    %c0_4 = arith.constant 0 : index
    %c0_5 = arith.constant 0 : index
    %7 = vector.load %arg3[%c0_4, %c0_5] : memref<8x128xf32, #tpu.memory_space<vmem>>, vector<1x128xf32>
    %8 = vector.broadcast %7 : vector<1x128xf32> to vector<8x128xf32>
    %9 = arith.addf %6, %8 : vector<8x128xf32>
    %10 = tpu.iota {dimensions = array<i32: 0>} : vector<8x128xi32>
    %c8_i32 = arith.constant 8 : i32
    %11 = arith.muli %arg0, %c8_i32 : i32
    %12 = vector.broadcast %11 : i32 to vector<8x128xi32>
    %13 = arith.addi %10, %12 : vector<8x128xi32>
    %c12_i32 = arith.constant 12 : i32
    %14 = vector.broadcast %c12_i32 : i32 to vector<8x128xi32>
    %15 = arith.cmpi slt, %13, %14 : vector<8x128xi32>
    %cst_6 = arith.constant 0.000000e+00 : f32
    %16 = vector.broadcast %cst_6 : f32 to vector<8x128xf32>
    %17 = arith.select %15, %9, %16 : vector<8x128xi1>, vector<8x128xf32>
    %c0_7 = arith.constant 0 : index
    %c0_8 = arith.constant 0 : index
    %18 = vector.load %arg4[%c0_7, %c0_8] : memref<8x128xf32, #tpu.memory_space<vmem>>, vector<1x128xf32>
    %cst_9 = arith.constant dense<0.000000e+00> : vector<128xf32>
    %19 = vector.multi_reduction <add>, %17, %cst_9 [0] : vector<8x128xf32> to vector<128xf32>
    %20 = vector.shape_cast %19 : vector<128xf32> to vector<1x128xf32>
    %21 = arith.addf %18, %20 : vector<1x128xf32>
    %c0_10 = arith.constant 0 : index
    %c0_11 = arith.constant 0 : index
    %22 = vector.load %arg4[%c0_10, %c0_11] : memref<8x128xf32, #tpu.memory_space<vmem>>, vector<1x128xf32>
    tpu.vector_store %arg4[%c0_10, %c0_11], %21 {strides = array<i32>} : memref<8x128xf32, #tpu.memory_space<vmem>>, vector<1x128xf32>,
    %c1 = arith.constant 1 : index
    %c0_12 = arith.constant 0 : index
    %23 = vector.load %arg4[%c1, %c0_12] : memref<8x128xf32, #tpu.memory_space<vmem>>, vector<1x128xf32>
    %24 = arith.mulf %17, %17 : vector<8x128xf32>
    %cst_13 = arith.constant dense<0.000000e+00> : vector<128xf32>
    %25 = vector.multi_reduction <add>, %24, %cst_13 [0] : vector<8x128xf32> to vector<128xf32>
    %26 = vector.shape_cast %25 : vector<128xf32> to vector<1x128xf32>
    %27 = arith.addf %23, %26 : vector<1x128xf32>
    %c1_14 = arith.constant 1 : index
    %c0_15 = arith.constant 0 : index
    %28 = vector.load %arg4[%c1_14, %c0_15] : memref<8x128xf32, #tpu.memory_space<vmem>>, vector<1x128xf32>
    tpu.vector_store %arg4[%c1_14, %c0_15], %27 {strides = array<i32>} : memref<8x128xf32, #tpu.memory_space<vmem>>, vector<1x128xf32>,
    %c1_i32 = arith.constant 1 : i32
    %29 = arith.cmpi eq, %arg0, %c1_i32 : i32
    %30 = arith.extui %29 : i1 to i32
    %c0_i32_16 = arith.constant 0 : i32
    %31 = arith.cmpi ne, %30, %c0_i32_16 : i32
    scf.if %31 {
      %c0_17 = arith.constant 0 : index
      %c0_18 = arith.constant 0 : index
      %32 = vector.load %arg4[%c0_17, %c0_18] : memref<8x128xf32, #tpu.memory_space<vmem>>, vector<1x128xf32>
      %cst_19 = arith.constant 0.0833333358 : f32
      %33 = vector.broadcast %cst_19 : f32 to vector<1x128xf32>
      %34 = arith.mulf %32, %33 : vector<1x128xf32>
      %c1_20 = arith.constant 1 : index
      %c0_21 = arith.constant 0 : index
      %35 = vector.load %arg4[%c1_20, %c0_21] : memref<8x128xf32, #tpu.memory_space<vmem>>, vector<1x128xf32>
      %cst_22 = arith.constant 0.0833333358 : f32
      %36 = vector.broadcast %cst_22 : f32 to vector<1x128xf32>
      %37 = arith.mulf %35, %36 : vector<1x128xf32>
      %38 = arith.mulf %34, %34 : vector<1x128xf32>
      %39 = arith.subf %37, %38 : vector<1x128xf32>
      %c1_23 = arith.constant 1 : index
      %c0_24 = arith.constant 0 : index
      %40 = vector.load %arg3[%c1_23, %c0_24] : memref<8x128xf32, #tpu.memory_space<vmem>>, vector<1x128xf32>
      %cst_25 = arith.constant 9.99999974E-6 : f32
      %41 = vector.broadcast %cst_25 : f32 to vector<1x128xf32>
      %42 = arith.addf %39, %41 : vector<1x128xf32>
      %43 = math.rsqrt %42 : vector<1x128xf32>
      %44 = arith.mulf %40, %43 : vector<1x128xf32>
      %c2 = arith.constant 2 : index
      %c0_26 = arith.constant 0 : index
      %45 = vector.load %arg3[%c2, %c0_26] : memref<8x128xf32, #tpu.memory_space<vmem>>, vector<1x128xf32>
      %46 = arith.mulf %34, %44 : vector<1x128xf32>
      %47 = arith.subf %45, %46 : vector<1x128xf32>
      %c0_27 = arith.constant 0 : index
      %c0_28 = arith.constant 0 : index
      %48 = vector.load %arg4[%c0_27, %c0_28] : memref<8x128xf32, #tpu.memory_space<vmem>>, vector<1x128xf32>
      tpu.vector_store %arg4[%c0_27, %c0_28], %44 {strides = array<i32>} : memref<8x128xf32, #tpu.memory_space<vmem>>, vector<1x128xf32>,
      %c1_29 = arith.constant 1 : index
      %c0_30 = arith.constant 0 : index
      %49 = vector.load %arg4[%c1_29, %c0_30] : memref<8x128xf32, #tpu.memory_space<vmem>>, vector<1x128xf32>
      tpu.vector_store %arg4[%c1_29, %c0_30], %47 {strides = array<i32>} : memref<8x128xf32, #tpu.memory_space<vmem>>, vector<1x128xf32>,
    } else {
    }
    return
  }
  func.func @transform_0(%arg0: i32) -> (i32, i32) {
    %c0_i32 = arith.constant 0 : i32
    %c0_i32_0 = arith.constant 0 : i32
    return %arg0, %c0_i32 : i32, i32
  }
  func.func @transform_1(%arg0: i32) -> (i32, i32) {
    %c0_i32 = arith.constant 0 : i32
    %c0_i32_0 = arith.constant 0 : i32
    %c0_i32_1 = arith.constant 0 : i32
    return %c0_i32, %c0_i32_0 : i32, i32
  }
  func.func @transform_2(%arg0: i32) -> (i32, i32) {
    %c0_i32 = arith.constant 0 : i32
    %c0_i32_0 = arith.constant 0 : i32
    %c0_i32_1 = arith.constant 0 : i32
    return %c0_i32, %c0_i32_0 : i32, i32
  }
  func.func @transform_3(%arg0: i32) -> (i32, i32) {
    %c0_i32 = arith.constant 0 : i32
    %c0_i32_0 = arith.constant 0 : i32
    %c0_i32_1 = arith.constant 0 : i32
    return %c0_i32, %c0_i32_0 : i32, i32
  }
}

</mosaic_0001>

<bundles_post_ra>
// kernel: tpu_custom_call.1
= control target key start
LH: loop header
LB: loop body
LE: loop exit
PB: predicated region body
PF: predicated region fallthrough
CT: control target
= control target key end

     0   :  { %8 = vsyncpa [#allocation3], 0  ;;  %s962_s0 = inlined_call_operand.hbm [shape: f32[16,128], index: 0, kind: input, shape index: {}]   ;;  %s963_s1 = inlined_call_operand.hbm [shape: bf16[128,128], index: 1, kind: input, shape index: {}]   ;;  %s964_s2 = inlined_call_operand.hbm [shape: f32[8,128], index: 2, kind: input, shape index: {}]   ;;  %s965_s3 = inlined_call_operand.hbm [shape: f32[8,128], index: 3, kind: output, shape index: {}]  }
   0x1   :  { %10 = vsyncpa [#allocation3 + $0x1], 0 }
   0x2   :  { %11 = vsyncpa [#allocation6], 0 }
   0x3   :  { %12 = vsyncpa [#allocation4], 0  ;;  %s762_s12 = smov 0   ;;  %s764_s13 = smov 0  }
   0x4   :  { %s766_s14 = smov 0   ;;  %s768_s15 = smov 0  }
   0x5 LB: > { %s781_s16 = sadd.s32 4294967295, %s731_s15   ;;  %p38_p0 = scmp.ne.s32.totalorder %s723_s13, %s719_s12  ;;  %s731_s15 = sphi %s768_s15, %s981_s15   ;;  %s727_s14 = sphi %s766_s14, %s980_s14   ;;  %s723_s13 = sphi %s764_s13, %s979_s13   ;;  %s719_s12 = sphi %s762_s12, %s978_s12  }
   0x6   : > { %p966_p1 = scmp.eq.s32.totalorder %s781_s16, 0  ;;  %p440_p2 = scmp.ge.s32.totalorder %s731_s15, 1 }
   0x7   : > { %p112_p3 = scmp.lt.s32.totalorder %s731_s15, 3  ;;  %s733_s19 = smov [#allocation5]  }
   0x8   : > { %p790_p5 = por %p966_p1, %p38_p0  ;;  %s124_s20 = sshll.u32 %s733_s19, 4  ;;  %s125_s20 = int_to_ptr.vmem [resolvable:$true] %s124_s20 }
   0x9   : > { %p794_p6 = pnand %p440_p2, %p112_p3  ;;  %s734_s22 = smov [#allocation7]  }
   0xa   : > { %s969_s17 = scalar_select %p790_p5, 1, 0 }
   0xb   : > { %s970_s18 = scalar_select %p794_p6, 1, 0 }
   0xc   : > { %p509_p7 = pneg %p794_p6  ;;  %s138_s23 = sshll.u32 %s734_s22, 4  ;;  %s806_s23 = int_to_ptr.vmem [resolvable:$true] %s138_s23 }
   0xd   : > { %s577_s26 = scalar_lea.hbm %s963_s1, 1024 }
   0xe   : > { %p802_p8 = pnand %p509_p7, %p966_p1  ;;  %p578_p9 = scmp.ne.s32.totalorder %s963_s1, %s577_s26 }
   0xf   : > { %p584_p13 = scmp.lt.u32.totalorder %s577_s26, %s963_s1 }
  0x10   : > { %p579_p10 = pneg %p802_p8 }
  0x12   : > { %p580_p11 = pnand %p579_p10, %p578_p9 }
  0x14   : > { %p581_p12 = pneg %p580_p11 }
  0x16   : > { %p586_p0 = pnand %p584_p13, %p581_p12 }
  0x18   : > { %589 = shalt.err (!%p586_p0)
}
  0x19   : > { %s590_s4 = scalar_lea.vmem %s125_s20, 1024  ;;  %p598_p4 = scmp.lt.s32.totalorder %s125_s20, %s125_s20 }
  0x1a   : > { %p591_p2 = scmp.ne.s32.totalorder %s125_s20, %s590_s4  ;;  %p599_p1 = scmp.lt.s32.totalorder %s590_s4, %s590_s4 }
  0x1c   : > { %p593_p3 = pnand %p591_p2, %p579_p10  ;;  %p600_p5 = por %p599_p1, %p598_p4 }
  0x1e   : > { %p594_p7 = pneg %p593_p3 }
  0x20   : > { %p601_p6 = pnand %p600_p5, %p594_p7 }
  0x22   : > { %604 = shalt.err (!%p601_p6)
}
  0x23   : > { %s735_s5 = smov 64   ;;  %s736_s6 = smov 4  }
  0x24   : > { %512 = dma.hbm_to_vmem [thread:$0]  (!%p802_p8), %s963_s1, 1024, %s125_s20, [#allocation6], %s735_s5, %s735_s5, %s736_s6  }
  0x25   : > { %s605_s11 = scalar_lea.hbm %s964_s2, 128 }
  0x26   : > { %p606_p9 = scmp.ne.s32.totalorder %s964_s2, %s605_s11  ;;  %p612_p5 = scmp.lt.u32.totalorder %s605_s11, %s964_s2 }
  0x28   : > { %p608_p1 = pnand %p606_p9, %p579_p10 }
  0x2a   : > { %p609_p4 = pneg %p608_p1 }
  0x2c   : > { %p614_p6 = pnand %p612_p5, %p609_p4 }
  0x2e   : > { %617 = shalt.err (!%p614_p6)
}
  0x2f   : > { %s618_s20 = scalar_lea.vmem %s806_s23, 128  ;;  %p626_p0 = scmp.lt.s32.totalorder %s806_s23, %s806_s23 }
  0x30   : > { %p619_p11 = scmp.ne.s32.totalorder %s806_s23, %s618_s20  ;;  %p627_p2 = scmp.lt.s32.totalorder %s618_s20, %s618_s20 }
  0x32   : > { %p621_p12 = pnand %p619_p11, %p579_p10  ;;  %p628_p3 = por %p627_p2, %p626_p0 }
  0x34   : > { %p622_p13 = pneg %p621_p12 }
  0x36   : > { %p629_p7 = pnand %p628_p3, %p622_p13 }
  0x38   : > { %632 = shalt.err (!%p629_p7)
}
  0x39   : > { %515 = dma.hbm_to_vmem [thread:$0]  (!%p802_p8), %s964_s2, 128, %s806_s23, [#allocation6]  }
  0x3a   : > { %s856_s27 = sadd.s32 1, %s731_s15   ;;  %s25_s28 = sadd.s32 1, %s727_s14 }
  0x3b   : > { %s22_s21 = ssub.s32 %s731_s15, %s856_s27  ;;  %p32_p10 = scmp.ne.s32.totalorder %s727_s14, %s723_s13 }
  0x3c   : > { %p23_p9 = scmp.eq.s32.totalorder %s22_s21, 0  ;;  %p33_p1 = scmp.eq.s32.totalorder %s731_s15, 0 }
  0x3d   : > { %p522_p4 = scmp.lt.s32.totalorder %s731_s15, 2  ;;  %s149_s29 = sand.u32 1, %s727_s14  }
  0x3e   : > { %s867_s30 = scalar_select %p23_p9, %s727_s14, %s25_s28  }
  0x3f   : > { %p34_p5 = por %p33_p1, %p32_p10  ;;  %s444_s4 = sshll.u32 %s149_s29, 3 }
  0x40   : > { %s445_s5 = sshll.u32 %s731_s15, 7  ;;  %s153_s23 = scalar_lea.vmem [#allocation2], %s444_s4 }
  0x41   : > { %s873_s8 = scalar_lea.hbm %s962_s0, %s445_s5  ;;  %s160_s9 = sshll.u32 %s153_s23, 4  ;;  %s879_s9 = int_to_ptr.vmem [resolvable:$true] %s160_s9 }
  0x42   : > { %p875_p8 = pnand %p522_p4, %p34_p5  ;;  %s150_s15 = scalar_lea.sflag [#allocation3], %s149_s29 }
  0x43   : > { %s633_s11 = scalar_lea.hbm %s873_s8, 128  ;;  %s638_s22 = scalar_lea.hbm %s962_s0, 256 }
  0x44   : > { %p634_p6 = scmp.ne.s32.totalorder %s873_s8, %s633_s11  ;;  %p635_p11 = pneg %p875_p8 }
  0x45   : > { %p639_p0 = scmp.lt.u32.totalorder %s873_s8, %s962_s0  ;;  %p640_p2 = scmp.lt.u32.totalorder %s638_s22, %s633_s11 }
  0x46   : > { %p636_p12 = pnand %p635_p11, %p634_p6  ;;  %p642_p7 = scmp.lt.u32.totalorder %s633_s11, %s873_s8 }
  0x47   : > { %p641_p3 = por %p640_p2, %p639_p0 }
  0x48   : > { %p637_p13 = pneg %p636_p12 }
  0x49   : > { %p643_p10 = por %p642_p7, %p641_p3 }
  0x4b   : > { %p644_p9 = pnand %p643_p10, %p637_p13 }
  0x4d   : > { %647 = shalt.err (!%p644_p9)
}
  0x4e   : > { %s648_s25 = scalar_lea.vmem %s879_s9, 128  ;;  %s737_s26 = smov [#allocation2]  }
  0x4f   : > { %p649_p1 = scmp.ne.s32.totalorder %s879_s9, %s648_s25  ;;  %s653_s28 = sshll.u32 %s737_s26, 4  ;;  %s654_s28 = int_to_ptr.vmem [resolvable:$false] %s653_s28 }
  0x50   : > { %s655_s21 = scalar_lea.vmem %s654_s28, 256  ;;  %p656_p6 = scmp.lt.s32.totalorder %s879_s9, %s654_s28 }
  0x51   : > { %p651_p4 = pnand %p649_p1, %p635_p11  ;;  %p657_p12 = scmp.lt.s32.totalorder %s655_s21, %s648_s25 }
  0x53   : > { %p652_p5 = pneg %p651_p4  ;;  %p658_p0 = por %p657_p12, %p656_p6 }
  0x55   : > { %p659_p2 = pnand %p658_p0, %p652_p5 }
  0x57   : > { %662 = shalt.err (!%p659_p2)
}
  0x58   : > { %519 = dma.hbm_to_vmem [thread:$0]  (!%p875_p8), %s873_s8, 128, %s879_s9, %s150_s15  }
  0x59   : > { %p973_p13 = scmp.ne.s32.totalorder %s970_s18, 0 }
  0x5a   : > { %s171_s29 = sand.u32 (!%p973_p13), 1, %s723_s13   ;;  %p974_p11 = scmp.ne.s32.totalorder (!%p973_p13), %s969_s17, 0 }
  0x5b   : > { %169 = sbr.rel (%p973_p13) target bundleno = 432 (0x1b0), region = 32  ;;  %s909_s4 = sshll.u32 (!%p973_p13), %s171_s29, 3 }
  0x5c   : > { %s172_s5 = scalar_lea.sflag (!%p973_p13), [#allocation3], %s171_s29  ;;  %s175_s6 = scalar_lea.vmem (!%p973_p13), [#allocation2], %s909_s4 }
  0x62   : > { %706 = dma.done.wait (%p974_p11), %s172_s5, 128  }
  0x63   : > { %708 = vsyncadd (%p974_p11), %s172_s5, 4294967168  ;;  %p975_p3 = scmp.eq.s32.totalorder %s781_s16, 0 }
  0x65   : > { %710 = dma.done.wait (%p975_p3), [#allocation6], 1152   ;;  %p976_p8 = pmov %p975_p3 }
  0x66   : > { %p977_p7 = scmp.ne.s32.totalorder %s781_s16, 0 }
  0x67   : > { %712 = vsyncadd (%p976_p8), [#allocation6], 4294966144  ;;  %v738_v0 = vmov (!%p977_p7), 0.0  }
  0x68   : > { %205 = sbr.rel (%p977_p7) target bundleno = 111 (0x6f), region = 48  ;;  %206 = vst [vmem:[#allocation8] sm:$0xff] (!%p977_p7), %v738_v0 }
  0x6f PF: > { %v567_v1 = vld [vmem:[#allocation5] sm:$0xff]   ;;  %v739_v2 = vmov 0.0   ;;  %v568_v3 = vld [vmem:[#allocation5 + $0x8] sm:$0xff]   ;;  %vm740_vm0 = vmmov 0   ;;  %v569_v4 = vld [vmem:[#allocation5 + $0x10] sm:$0xff]   ;;  %v318_v12 = vlaneseq  ;;  %s460_s17 = sshll.u32 %s781_s16, 3 }
  0x70   : > { %475 = vmatprep.subr.bf16.mxu0 %v739_v2  ;;  %491 = vmatprep.mubr.msk.bf16.mxu0 %vm740_vm0, %v739_v2  ;;  %v570_v5 = vld [vmem:[#allocation5 + $0x18] sm:$0xff]   ;;  %v571_v6 = vld [vmem:[#allocation5 + $0x20] sm:$0xff]   ;;  %v572_v7 = vld [vmem:[#allocation5 + $0x28] sm:$0xff]   ;;  %v321_v14 = vstv %s460_s17  ;;  %p461_p10 = scmp.ne.s32.totalorder %s781_s16, 1 }
  0x71   : > { %476 = vmatpush3.bf16.msra.mxu0 %v567_v1  ;;  %v573_v8 = vld [vmem:[#allocation5 + $0x30] sm:$0xff]   ;;  %v574_v9 = vld [vmem:[#allocation5 + $0x38] sm:$0xff]   ;;  %v319_v13 = vshrl.u32 %v318_v12, 7  ;;  %v451_v16 = vld [vmem:[#allocation7] ss:$0 sm:$0xff] }
  0x72   : > { %477 = vmatprep.subr.bf16.mxu0 %v739_v2  ;;  %v207_v10 = vld [vmem:[%s175_s6] sm:$0xff]  ;;  %v325_v33 = vld [vmem:[#allocation8] sm:$0x1]  ;;  %v334_v36 = vld [vmem:[#allocation8 + $0x1] sm:$0x1] }
  0x73   : > { %v208_v11 = vpack.c.bf16 %v207_v10, %v207_v10  ;;  %v322_v15 = vadd.s32 %v321_v14, %v319_v13  ;;  %v354_v47 = vld [vmem:[#allocation7 + $0x1] sm:$0x1] (!%p461_p10)  ;;  %v358_v50 = vld [vmem:[#allocation7 + $0x2] sm:$0x1] (!%p461_p10) }
  0x75   : > { %478 = vmatpush3.bf16.msra.mxu0 %v568_v3  ;;  %vm323_vm1 = vcmp.lt.s32.totalorder %v322_v15, 12 }
  0x76   : > { %479 = vmatprep.subr.bf16.mxu0 %v739_v2 }
  0x79   : > { %480 = vmatpush3.bf16.msra.mxu0 %v569_v4 }
  0x7a   : > { %481 = vmatprep.subr.bf16.mxu0 %v739_v2 }
  0x7d   : > { %482 = vmatpush3.bf16.msra.mxu0 %v570_v5 }
  0x7e   : > { %483 = vmatprep.subr.bf16.mxu0 %v739_v2 }
  0x81   : > { %484 = vmatpush3.bf16.msra.mxu0 %v571_v6 }
  0x82   : > { %485 = vmatprep.subr.bf16.mxu0 %v739_v2 }
  0x85   : > { %486 = vmatpush3.bf16.msra.mxu0 %v572_v7 }
  0x86   : > { %487 = vmatprep.subr.bf16.mxu0 %v739_v2 }
  0x89   : > { %488 = vmatpush3.bf16.msra.mxu0 %v573_v8 }
  0x8a   : > { %489 = vmatprep.subr.bf16.mxu0 %v739_v2 }
  0x8d   : > { %490 = vmatpush3.bf16.msra.mxu0 %v574_v9 }
  0x90   : > { %492 = vmatmul.mubr.bf16.vlgmr.msra.gmra.mrb[0].mxu0 %v208_v11 }
 0x163   : > { %v312_v17 = vpop.f32.mrb[0].mxu0 }
 0x164   : > { %v313_v18 = vadd.f32 %v451_v16, %v312_v17  ;;  %v493_v19 = vpop.f32.mrb[1].mxu0 }
 0x165   : > { %v315_v20 = vpop.f32.mrb[2].mxu0 }
 0x166   : > { %v324_v21 = vsel %vm323_vm1, %v313_v18, 0.0  ;;  %v494_v22 = vpop.f32.mrb[3].mxu0 }
 0x167   : > { %v326_v23 = vrot.slane %v324_v21, 4  ;;  %v335_v24 = vmul.f32 %v324_v21, %v324_v21 }
 0x169   : > { %v327_v25 = vadd.f32 %v326_v23, %v324_v21  ;;  %v336_v26 = vrot.slane %v335_v24, 4 }
 0x16b   : > { %v328_v27 = vrot.slane %v327_v25, 2  ;;  %v337_v28 = vadd.f32 %v336_v26, %v335_v24 }
 0x16d   : > { %v329_v29 = vadd.f32 %v328_v27, %v327_v25  ;;  %v338_v30 = vrot.slane %v337_v28, 2 }
 0x16f   : > { %v330_v31 = vrot.slane %v329_v29, 1  ;;  %v339_v32 = vadd.f32 %v338_v30, %v337_v28 }
 0x171   : > { %v331_v34 = vadd.f32 %v330_v31, %v329_v29  ;;  %v340_v35 = vrot.slane %v339_v32, 1  ;;  %347 = sbr.rel (%p461_p10) target bundleno = 407 (0x197), region = 52 }
 0x173   : > { %v332_v37 = vadd.f32 %v331_v34, %v325_v33  ;;  %v341_v38 = vadd.f32 %v340_v35, %v339_v32 }
 0x175   : > { %333 = vst [vmem:[#allocation8] sm:$0x1] %v332_v37  ;;  %v342_v39 = vadd.f32 %v341_v38, %v334_v36 }
 0x177   : > { %343 = vst [vmem:[#allocation8 + $0x1] sm:$0x1] %v342_v39 }
 0x17c   : > { %v348_v40 = vld [vmem:[#allocation8] sm:$0x1] }
 0x17d   : > { %v349_v42 = vmul.f32 0.083333336, %v348_v40 }
 0x17e   : > { %v350_v41 = vld [vmem:[#allocation8 + $0x1] sm:$0x1] }
 0x17f   : > { %v351_v43 = vmul.f32 0.083333336, %v350_v41  ;;  %v352_v44 = vmul.f32 %v349_v42, %v349_v42 }
 0x181   : > { %v353_v45 = vsub.f32 %v351_v43, %v352_v44 }
 0x183   : > { %v355_v46 = vadd.f32 1e-05, %v353_v45 }
 0x185   : > { %575 = vrsqrt.f32 %v355_v46 }
 0x18f   : > { %v576_v48 = vpop.eup %575 }
 0x190   : > { %v357_v49 = vmul.f32 %v576_v48, %v354_v47 }
 0x192   : > { %361 = vst [vmem:[#allocation8] sm:$0x1] %v357_v49  ;;  %v359_v51 = vmul.f32 %v357_v49, %v349_v42 }
 0x194   : > { %v360_v52 = vsub.f32 %v358_v50, %v359_v51 }
 0x196   : > { %362 = vst [vmem:[#allocation8 + $0x1] sm:$0x1] %v360_v52 }
 0x197 PF: > { %p525_p9 = scmp.eq.s32.totalorder %s781_s16, 1  ;;  %s741_s18 = smov [#allocation8]  }
 0x198   : > { %s370_s7 = sshll.u32 %s741_s18, 4  ;;  %s371_s7 = int_to_ptr.vmem [resolvable:$true] %s370_s7 }
 0x199   : > { %s663_s8 = scalar_lea.vmem %s371_s7, 128  ;;  %p670_p6 = scmp.lt.s32.totalorder %s371_s7, %s371_s7 }
 0x19a   : > { %p664_p1 = scmp.ne.s32.totalorder %s371_s7, %s663_s8  ;;  %p671_p12 = scmp.lt.s32.totalorder %s663_s8, %s663_s8 }
 0x19c   : > { %p665_p4 = pnand %p664_p1, %p525_p9  ;;  %p672_p0 = por %p671_p12, %p670_p6 }
 0x19e   : > { %p666_p5 = pneg %p665_p4 }
 0x1a0   : > { %p673_p2 = pnand %p672_p0, %p666_p5 }
 0x1a2   : > { %676 = shalt.err (!%p673_p2)
}
 0x1a3   : > { %s677_s10 = scalar_lea.hbm %s965_s3, 128 }
 0x1a4   : > { %p678_p13 = scmp.ne.s32.totalorder %s965_s3, %s677_s10  ;;  %p683_p8 = scmp.lt.u32.totalorder %s677_s10, %s965_s3 }
 0x1a6   : > { %p679_p11 = pnand %p678_p13, %p525_p9 }
 0x1a8   : > { %p680_p3 = pneg %p679_p11 }
 0x1aa   : > { %p685_p7 = pnand %p683_p8, %p680_p3 }
 0x1ac   : > { %688 = shalt.err (!%p685_p7)
}
 0x1ad   : > { %506 = dma.vmem_to_hbm [thread:$0]  (%p525_p9), %s371_s7, 128, %s965_s3, [#allocation4]  }
 0x1ae   : > { %714 = dma.done.wait (%p525_p9), [#allocation4], 128  }
 0x1af   : > { %716 = vsyncadd (%p525_p9), [#allocation4], 4294967168 }
 0x1b0 PF: > { %p15_p10 = scmp.ge.s32.totalorder %s856_s27, 4   ;;  %s978_s12 = smov %s723_s13 }
 0x1b1   : > { %s979_s13 = smov %s727_s14  ;;  %s980_s14 = smov %s867_s30 }
 0x1b2   : > { %s981_s15 = smov %s856_s27  ;;  %17 = sbr.rel (!%p15_p10) target bundleno = 5 (0x5), region = 85 }
 0x1b9   :  { %383 = vsyncpa [#allocation3], 1 }
 0x1ba   :  { %385 = vsyncpa [#allocation3 + $0x1], 1 }
 0x1bb   :  { %386 = vsyncpa [#allocation6], 1 }
 0x1bc   :  { %387 = vsyncpa [#allocation4], 1 }
 0x1bd   :  { %389 = vsyncpa [#allocation4 + $0x1], 1 }

</bundles_post_ra>
